<compile_context>
chip_gen: v7x
topology: tpu7x:2x2x1
jax: 0.10.0
libtpu: 0.0.40
codegen_flags: <defaults>
</compile_context>

<pallas_src>
import jax
import jax.numpy as jnp
from jax import lax
from jax.experimental import pallas as pl
from jax.experimental.pallas import tpu as pltpu


def _pair(inp):
    if isinstance(inp, (list, tuple)):
        return inp
    return (inp, inp)


def _round_up(x, m):
    return ((x + m - 1) // m) * m


def receiver_params(key, in_channels, out_channels, kernel_size=3, dtype=jnp.float32):
    """Deterministic init mimicking nn.Conv2d default (U(-1/sqrt(fan_in), 1/sqrt(fan_in)))."""
    kh, kw = _pair(kernel_size)
    fan_in = in_channels * kh * kw
    bound = 1.0 / (fan_in ** 0.5)
    k_w, k_b = jax.random.split(key)
    weight = jax.random.uniform(k_w, (out_channels, in_channels, kh, kw), dtype, -bound, bound)
    bias = jax.random.uniform(k_b, (out_channels,), dtype, -bound, bound)
    return weight, bias


def _gemm_bias_kernel(p_ref, w_ref, b_ref, o_ref):
    # p_ref: (K_pad, TM)   im2col patch tile for one image (lane axis = HoWo tile)
    # w_ref: (Cout, K_pad) flattened conv weights
    # b_ref: (Cout, 1)     bias
    # o_ref: (Cout, TM)    lane-dense output tile
    acc = jnp.dot(w_ref[...], p_ref[...],
                  preferred_element_type=jnp.float32,
                  precision=lax.Precision.HIGHEST)
    o_ref[...] = (acc + b_ref[...]).astype(o_ref.dtype)


def _vmem_limit_bytes():
    cap = None
    try:
        cap = int(pltpu.get_tpu_info().vmem_capacity_bytes)
    except Exception:
        cap = None
    if not cap:
        cap = 64 * 1024 * 1024  # conservative fallback
    # ~half of physical: 64 MiB on v5e/v6e (128 MiB phys), 32 MiB on v7x (64 MiB phys).
    return int(min(96 * 1024 * 1024, max(32 * 1024 * 1024, cap // 2)))


def receiver_forward(x_nchw, weight, bias, kernel_size=3):
    kh, kw = _pair(kernel_size)
    # Receiver's derived conv hyper-parameters.
    pad_h = (kh ** 2 - kh * 3) // 2 + 1
    pad_w = (kw ** 2 - kw * 3) // 2 + 1
    stride_h, stride_w = kh, kw
    dil_h, dil_w = kh - 1, kw - 1

    N, Cin, H, W = x_nchw.shape
    Cout = weight.shape[0]
    H_out = (H + 2 * pad_h - dil_h * (kh - 1) - 1) // stride_h + 1
    W_out = (W + 2 * pad_w - dil_w * (kw - 1) - 1) // stride_w + 1
    HoWo = H_out * W_out
    K = kh * kw * Cin
    K_pad = _round_up(K, 8)            # f32 sublane granularity
    itemsize = jnp.dtype(x_nchw.dtype).itemsize

    # --- im2col glue (pure data movement; allow_input_fusion lets XLA fuse it
    #     into the pallas_call operand instead of materializing it in HBM) ----
    x = jnp.transpose(x_nchw, (0, 2, 3, 1))                             # NHWC
    x = jnp.pad(x, ((0, 0), (pad_h, pad_h), (pad_w, pad_w), (0, 0)))
    taps = []
    for i in range(kh):
        for j in range(kw):
            h0 = i * dil_h
            w0 = j * dil_w
            taps.append(x[:, h0:h0 + stride_h * (H_out - 1) + 1:stride_h,
                             w0:w0 + stride_w * (W_out - 1) + 1:stride_w, :])
    # (T, N, Ho, Wo, Cin) -> (N, K=(T,Cin), Ho*Wo)
    patches = jnp.stack(taps, axis=0)
    patches = jnp.transpose(patches, (1, 0, 4, 2, 3)).reshape(N, K, HoWo)

    # Weight (Cout,Cin,KH,KW) -> (Cout,KH,KW,Cin) -> (Cout,K): matches patch K order.
    w_mat = jnp.transpose(weight, (0, 2, 3, 1)).reshape(Cout, K)
    b_mat = bias.reshape(Cout, 1)

    # --- tile sizing ----------------------------------------------------------
    vmem_limit = _vmem_limit_bytes()
    budget = vmem_limit // 2                       # headroom under the scoped limit
    bytes_per_col = itemsize * 2 * (K_pad + Cout)  # double-buffered patches + out columns
    tm_cap = max(128, min(8192, (budget // bytes_per_col) // 128 * 128))
    TM = min(tm_cap, _round_up(HoWo, 128))
    HoWo_pad = _round_up(HoWo, TM)
    # v7x: make sure the parallel grid has >= 2 steps so both TensorCores get work.
    if N * (HoWo_pad // TM) < 2 and TM >= 256:
        TM //= 2
        HoWo_pad = _round_up(HoWo, TM)
    tiles_per_img = HoWo_pad // TM

    patches = jnp.pad(patches, ((0, 0), (0, K_pad - K), (0, HoWo_pad - HoWo)))
    w_mat = jnp.pad(w_mat, ((0, 0), (0, K_pad - K)))

    flops = 2 * N * HoWo_pad * K_pad * Cout
    bytes_accessed = itemsize * (N * K_pad * HoWo_pad + Cout * K_pad + Cout
                                 + N * Cout * HoWo_pad)

    cp_kwargs = dict(dimension_semantics=("parallel", "parallel"),
                     vmem_limit_bytes=vmem_limit)
    try:
        compiler_params = pltpu.CompilerParams(
            allow_input_fusion=[True, False, False], **cp_kwargs)
    except TypeError:  # older jax without allow_input_fusion
        compiler_params = pltpu.CompilerParams(**cp_kwargs)

    out_padded = pl.pallas_call(
        _gemm_bias_kernel,
        out_shape=jax.ShapeDtypeStruct((N, Cout, HoWo_pad), x_nchw.dtype),
        grid_spec=pltpu.PrefetchScalarGridSpec(
            num_scalar_prefetch=0,
            grid=(N, tiles_per_img),
            in_specs=[
                pl.BlockSpec((None, K_pad, TM), lambda n, t: (n, 0, t)),
                pl.BlockSpec((Cout, K_pad), lambda n, t: (0, 0)),
                pl.BlockSpec((Cout, 1), lambda n, t: (0, 0)),
            ],
            out_specs=pl.BlockSpec((None, Cout, TM), lambda n, t: (n, 0, t)),
        ),
        compiler_params=compiler_params,
        cost_estimate=pl.CostEstimate(flops=int(flops), transcendentals=0,
                                      bytes_accessed=int(bytes_accessed)),
    )(patches, w_mat, b_mat)

    # (N, Cout, HoWo_pad) -> NCHW.  When HoWo is already a multiple of TM the
    # slice is a no-op and the reshape is free (no transpose epilogue).
    return out_padded[:, :, :HoWo].reshape(N, Cout, H_out, W_out)


if __name__ == "__main__":
    key = jax.random.PRNGKey(0)
    k_x, k_p = jax.random.split(key)

    N, Cin, H, W = 2, 4, 16, 16
    Cout, ksize = 8, 3

    x = jax.random.normal(k_x, (N, Cin, H, W), dtype=jnp.float32)
    weight, bias = receiver_params(k_p, Cin, Cout, ksize)

    fwd = jax.jit(receiver_forward, static_argnames=("kernel_size",))
    y = jax.block_until_ready(fwd(x, weight, bias, kernel_size=ksize))

    # Reference: same conv via XLA, matching Receiver's hyper-parameters.
    ref = lax.conv_general_dilated(
        x, weight,
        window_strides=(ksize, ksize),
        padding=[(1, 1), (1, 1)],
        rhs_dilation=(ksize - 1, ksize - 1),
        dimension_numbers=("NCHW", "OIHW", "NCHW"),
        precision=lax.Precision.HIGHEST,
    ) + bias.reshape(1, -1, 1, 1)

    assert y.shape == ref.shape, (y.shape, ref.shape)
    assert jnp.allclose(y, ref, atol=1e-4, rtol=1e-4), float(jnp.max(jnp.abs(y - ref)))
    print("KERNEL_OK")
</pallas_src>

<mosaic_0001>
module attributes {stable_mosaic.version = 11 : i64} {
  func.func @_gemm_bias_kernel(%arg0: i32, %arg1: i32, %arg2: memref<1x40x128xf32, #tpu.memory_space<vmem>>, %arg3: memref<8x40xf32, #tpu.memory_space<vmem>>, %arg4: memref<8x1xf32, #tpu.memory_space<vmem>>, %arg5: memref<1x8x128xf32, #tpu.memory_space<vmem>>) attributes {dimension_semantics = [#tpu.dimension_semantics<parallel>, #tpu.dimension_semantics<parallel>], iteration_bounds = array<i64: 2, 1>, scalar_prefetch = 0 : i64, scratch_operands = 0 : i64, tpu.core_type = #tpu.core_type<tc>, window_params = [{transform_indices = @transform_0, window_bounds = array<i64: 1, 40, 128>}, {pipeline_mode = #tpu.pipeline_mode<synchronous>, transform_indices = @transform_1, window_bounds = array<i64: 8, 40>}, {pipeline_mode = #tpu.pipeline_mode<synchronous>, transform_indices = @transform_2, window_bounds = array<i64: 8, 1>}, {transform_indices = @transform_3, window_bounds = array<i64: 1, 8, 128>}]} {
    %c0 = arith.constant 0 : index
    %c0_0 = arith.constant 0 : index
    %0 = vector.load %arg3[%c0, %c0_0] : memref<8x40xf32, #tpu.memory_space<vmem>>, vector<8x40xf32>
    %c0_1 = arith.constant 0 : index
    %c0_2 = arith.constant 0 : index
    %c0_3 = arith.constant 0 : index
    %1 = vector.load %arg2[%c0_1, %c0_2, %c0_3] : memref<1x40x128xf32, #tpu.memory_space<vmem>>, vector<1x40x128xf32>
    %2 = vector.shape_cast %1 : vector<1x40x128xf32> to vector<40x128xf32>
    %cst = arith.constant dense<0.000000e+00> : vector<8x128xf32>
    %3 = tpu.matmul %0, %2, %cst {dimension_numbers = #tpu.dot_dimension_numbers<[1], [0], [0], [1], [0, 0, 1, 1], [], []>, precision = #tpu.contract_precision<fp32>} : vector<8x40xf32>, vector<40x128xf32>, vector<8x128xf32> -> vector<8x128xf32>
    %c0_4 = arith.constant 0 : index
    %c0_5 = arith.constant 0 : index
    %4 = vector.load %arg4[%c0_4, %c0_5] : memref<8x1xf32, #tpu.memory_space<vmem>>, vector<8x1xf32>
    %5 = vector.broadcast %4 : vector<8x1xf32> to vector<8x128xf32>
    %6 = arith.addf %3, %5 : vector<8x128xf32>
    %c0_6 = arith.constant 0 : index
    %c0_7 = arith.constant 0 : index
    %c0_8 = arith.constant 0 : index
    %7 = vector.load %arg5[%c0_6, %c0_7, %c0_8] : memref<1x8x128xf32, #tpu.memory_space<vmem>>, vector<1x8x128xf32>
    %8 = vector.shape_cast %7 : vector<1x8x128xf32> to vector<8x128xf32>
    %9 = vector.shape_cast %6 : vector<8x128xf32> to vector<1x8x128xf32>
    tpu.vector_store %arg5[%c0_6, %c0_7, %c0_8], %9 {strides = array<i32>} : memref<1x8x128xf32, #tpu.memory_space<vmem>>, vector<1x8x128xf32>,
    return
  }
  func.func @transform_0(%arg0: i32, %arg1: i32) -> (i32, i32, i32) {
    %c0_i32 = arith.constant 0 : i32
    %c0_i32_0 = arith.constant 0 : i32
    return %arg0, %c0_i32, %arg1 : i32, i32, i32
  }
  func.func @transform_1(%arg0: i32, %arg1: i32) -> (i32, i32) {
    %c0_i32 = arith.constant 0 : i32
    %c0_i32_0 = arith.constant 0 : i32
    %c0_i32_1 = arith.constant 0 : i32
    return %c0_i32, %c0_i32_0 : i32, i32
  }
  func.func @transform_2(%arg0: i32, %arg1: i32) -> (i32, i32) {
    %c0_i32 = arith.constant 0 : i32
    %c0_i32_0 = arith.constant 0 : i32
    %c0_i32_1 = arith.constant 0 : i32
    return %c0_i32, %c0_i32_0 : i32, i32
  }
  func.func @transform_3(%arg0: i32, %arg1: i32) -> (i32, i32, i32) {
    %c0_i32 = arith.constant 0 : i32
    %c0_i32_0 = arith.constant 0 : i32
    return %arg0, %c0_i32, %arg1 : i32, i32, i32
  }
}

</mosaic_0001>

<bundles_post_ra>
// kernel: receiver_forward.2
= control target key start
LH: loop header
LB: loop body
LE: loop exit
PB: predicated region body
PF: predicated region fallthrough
CT: control target
= control target key end

     0   :  { %s1183_s17 = smov 0   ;;  %s1185_s18 = smov 0   ;;  %s1288_s0 = inlined_call_operand.vmem [shape: f32[8,40], index: 0, kind: input, shape index: {}]   ;;  %s1289_s1 = inlined_call_operand.vmem [shape: f32[8,1], index: 1, kind: input, shape index: {}]   ;;  %s1290_s2 = inlined_call_operand.vmem [shape: f32[2,36,25], index: 2, kind: input, shape index: {}]   ;;  %s1291_s3 = inlined_call_operand.<no memory space> [shape: f32[], index: 3, kind: input, shape index: {}]   ;;  %s1292_s4 = inlined_call_operand.vmem [shape: f32[2,8,128], index: 4, kind: output, shape index: {}]  }
   0x1   :  { %v1181_v0 = vstv %s1291_s3  ;;  %s1187_s19 = smov 0  }
   0x2 LB: > { %s27_s3 = sadd.s32 1, %s1143_s18  ;;  %p926_p0 = scmp.ge.s32.totalorder %s1147_s19, 1  ;;  %s1147_s19 = sphi %s1187_s19, %s15_s19   ;;  %s1143_s18 = sphi %s1185_s18, %s1294_s18   ;;  %s1139_s17 = sphi %s1183_s17, %s1293_s17  }
   0x3   : > { %p29_p1 = scmp.ge.s32.totalorder %s27_s3, 2  ;;  %p162_p2 = scmp.lt.s32.totalorder %s1147_s19, 3 }
   0x5   : > { %s1296_s3 = smov (%p29_p1, %s27_s3), 0  ;;  %p163_p3 = pnand %p926_p0, %p162_p2 }
   0x6   : > { %p195_p4 = scmp.lt.s32.totalorder (!%p163_p3), %s1139_s17, 1  ;;  %v226_v1 = vlaneseq (!%p163_p3)  ;;  %v330_v2 = vld [vmem:[%s1288_s0] sm:$0xff] (!%p163_p3)  ;;  %v1149_v3 = vmov (!%p163_p3), 0.0|0.0   ;;  %vm342_vm0 = vcmask (!%p163_p3), 326656   ;;  %vm1150_vm1 = vmmov (!%p163_p3), 0  }
   0x7   : > { %166 = sbr.rel (%p163_p3) target bundleno = 272 (0x110), region = 32  ;;  %1049 = vmatprep.subr.bf16.mxu1 (!%p163_p3), %v1149_v3  ;;  %1067 = vmatprep.subr.bf16.mxu0 (!%p163_p3), %v1149_v3  ;;  %v336_v4 = vld [vmem:[%s1289_s1] sm:$0xff] (!%p163_p3)  ;;  %v1151_v7 = vmov (!%p163_p3), 0.0   ;;  %v344_v8 = vsel (!%p163_p3), %vm342_vm0, %v330_v2, 0  ;;  %v1152_v10 = vmov (!%p163_p3), 0  }
   0x8   : > { %v227_v5 = vand.u32 (!%p163_p3), 127, %v226_v1  ;;  %v316_v6 = vshrl.u32 (!%p163_p3), %v226_v1, 7  ;;  %981 = vmatprep.mubr.msk.f32.mxu1 (!%p163_p3), %vm1150_vm1, %v1151_v7  ;;  %1020 = vmatprep.mubr.msk.f32.mxu0 (!%p163_p3), %vm1150_vm1, %v1151_v7  ;;  %v1215_v9 = vand.u32 (!%p163_p3), 4294901760, %v344_v8 }
   0x9   : > { %1124 = vset.pattern.permute.xlu0 (!%p163_p3), %v1152_v10 }
   0xa   : > { %v317_v11 = vadd.s32 (!%p163_p3), 32, %v316_v6  ;;  %339 = vperm.xlu0 (!%p163_p3), %1124, %v336_v4   ;;  %vm230_vm2 = vcmp.lt.s32.totalorder (!%p163_p3), %v227_v5, 25  ;;  %v1222_v12 = vsub.f32 (!%p163_p3), %v344_v8, %v1215_v9 }
   0xc   : > { %vm318_vm3 = vcmp.lt.s32.totalorder (!%p163_p3), %v317_v11, 36  ;;  %v418_v27 = vand.u32 (!%p163_p3), 4294901760, %v1222_v12 }
   0xe   : > { %s1298_s17 = smov (!%p195_p4, %s1139_s17), 1  ;;  %v419_v40 = vsub.f32 %v1222_v12, %v418_v27 }
   0xf   : > { %s1095_s24 = smul.u32 40, %s1298_s17  ;;  %s928_s28 = sshll.u32 %s1298_s17, 3 }
  0x10   : > { %v420_v48 = vand.u32 4294901760, %v419_v40  ;;  %s211_s5 = scalar_lea.vmem %s1292_s4, %s928_s28 }
  0x11   : > { %s202_s27 = scalar_lea.vmem %s1290_s2, %s1095_s24 }
  0x12   : > { %v215_v13 = vld [vmem:[%s202_s27] sm:$0xff]  ;;  %v929_v14 = vld [vmem:[%s202_s27 + $0x8] sm:$0xff]  ;;  %v930_v15 = vld [vmem:[%s202_s27 + $0x10] sm:$0xff] }
  0x13   : > { %v231_v16 = vsel %vm230_vm2, %v215_v13, %v1181_v0  ;;  %v254_v17 = vsel %vm230_vm2, %v929_v14, %v1181_v0  ;;  %v278_v18 = vsel %vm230_vm2, %v930_v15, %v1181_v0  ;;  %v931_v19 = vld [vmem:[%s202_s27 + $0x18] sm:$0xff]  ;;  %v932_v20 = vld [vmem:[%s202_s27 + $0x20] sm:$0xff] }
  0x14   : > { %v347_v21 = vand.u32 4294901760, %v231_v16  ;;  %v350_v22 = vand.u32 4294901760, %v254_v17  ;;  %v302_v23 = vsel %vm230_vm2, %v931_v19, %v1181_v0  ;;  %v353_v24 = vand.u32 4294901760, %v278_v18 }
  0x15   : > { %v356_v25 = vand.u32 4294901760, %v302_v23  ;;  %v319_v26 = vsel %vm318_vm3, %v932_v20, %v1181_v0 }
  0x16   : > { %v1050_v28 = vpack.c.bf16 %v350_v22, %v347_v21  ;;  %v428_v29 = vsub.f32 %v231_v16, %v347_v21  ;;  %v435_v30 = vsub.f32 %v254_v17, %v350_v22  ;;  %v1234_v31 = vsub.f32 %v278_v18, %v353_v24 }
  0x17   : > { %v1236_v32 = vsub.f32 %v302_v23, %v356_v25  ;;  %v326_v33 = vsel %vm230_vm2, %v319_v26, %v1181_v0  ;;  %v1053_v34 = vpack.c.bf16 %v356_v25, %v353_v24 }
  0x18   : > { %1051 = vmatpush3.bf16.msra.mxu1 %v1050_v28  ;;  %1069 = vmatpush3.bf16.msra.mxu0 %v1050_v28  ;;  %v429_v35 = vand.u32 4294901760, %v428_v29  ;;  %v436_v36 = vand.u32 4294901760, %v435_v30  ;;  %v443_v37 = vand.u32 4294901760, %v1234_v31  ;;  %v359_v38 = vand.u32 4294901760, %v326_v33 }
  0x19   : > { %1052 = vmatprep.subr.bf16.mxu1 %v1149_v3  ;;  %1070 = vmatprep.subr.bf16.mxu0 %v1149_v3  ;;  %v450_v39 = vand.u32 4294901760, %v1236_v32  ;;  %v1062_v58 = vpack.c.bf16 %v435_v30, %v428_v29  ;;  %v1065_v59 = vpack.c.bf16 %v1236_v32, %v1234_v31 }
  0x1a   : > { %v430_v41 = vsub.f32 %v428_v29, %v429_v35  ;;  %v437_v42 = vsub.f32 %v435_v30, %v436_v36  ;;  %v456_v43 = vsub.f32 %v326_v33, %v359_v38  ;;  %v444_v44 = vsub.f32 %v1234_v31, %v443_v37 }
  0x1b   : > { %v451_v45 = vsub.f32 %v1236_v32, %v450_v39  ;;  %v1074_v49 = vpack.c.bf16 %v436_v36, %v429_v35  ;;  %v1077_v55 = vpack.c.bf16 %v450_v39, %v443_v37 }
  0x1c   : > { %1054 = vmatpush3.bf16.msra.mxu1 %v1053_v34  ;;  %1072 = vmatpush3.bf16.msra.mxu0 %v1053_v34  ;;  %v431_v46 = vand.u32 4294901760, %v430_v41  ;;  %v438_v47 = vand.u32 4294901760, %v437_v42  ;;  %v445_v51 = vand.u32 4294901760, %v444_v44  ;;  %v457_v53 = vand.u32 4294901760, %v456_v43 }
  0x1d   : > { %979 = vmatprep.subr.mxu1 %v1151_v7  ;;  %1018 = vmatprep.subr.mxu0 %v1151_v7  ;;  %v452_v52 = vand.u32 4294901760, %v451_v45 }
  0x1e   : > { %v1056_v50 = vpack.c.bf16 %v438_v47, %v431_v46  ;;  %v458_v56 = vsub.f32 %v456_v43, %v457_v53 }
  0x1f   : > { %v1059_v54 = vpack.c.bf16 %v452_v52, %v445_v51 }
  0x20   : > { %980 = vmatpush3.msra.mxu1 %v359_v38  ;;  %1019 = vmatpush3.msra.mxu0 %v359_v38  ;;  %v459_v57 = vand.u32 4294901760, %v458_v56 }
  0x21   : > { %1055 = vmatprep.subr.bf16.mxu1 %v1149_v3  ;;  %1073 = vmatprep.subr.bf16.mxu0 %v1149_v3 }
  0x22   : > { %982 = vmatmul.mubr.f32.vlgmr.msra.gmra.mrb[0].mxu1 %v420_v48  ;;  %1021 = vmatmul.mubr.f32.vlgmr.msra.gmra.mrb[0].mxu0 %v418_v27 }
  0x23   : > { %1057 = vmatpush3.bf16.msra.mxu1 %v1056_v50  ;;  %1075 = vmatpush3.bf16.msra.mxu0 %v1074_v49 }
  0x24   : > { %1058 = vmatprep.subr.bf16.mxu1 %v1149_v3  ;;  %1076 = vmatprep.subr.bf16.mxu0 %v1149_v3 }
  0x25   : > { %994 = vmatprep.mubr.msk.f32.mxu1 %vm1150_vm1, %v1151_v7  ;;  %1033 = vmatprep.mubr.msk.f32.mxu0 %vm1150_vm1, %v1151_v7 }
  0x27   : > { %1060 = vmatpush3.bf16.msra.mxu1 %v1059_v54  ;;  %1078 = vmatpush3.bf16.msra.mxu0 %v1077_v55 }
  0x28   : > { %992 = vmatprep.subr.mxu1 %v1151_v7  ;;  %1031 = vmatprep.subr.mxu0 %v1151_v7 }
  0x2b   : > { %993 = vmatpush3.msra.mxu1 %v459_v57  ;;  %1032 = vmatpush3.msra.mxu0 %v457_v53 }
  0x2c   : > { %1061 = vmatprep.subr.bf16.mxu1 %v1149_v3  ;;  %1079 = vmatprep.subr.bf16.mxu0 %v1149_v3 }
  0x2d   : > { %995 = vmatmul.mubr.f32.vlgmr.msra.gmra.mrb[0].mxu1 %v1215_v9  ;;  %1034 = vmatmul.mubr.f32.vlgmr.msra.gmra.mrb[0].mxu0 %v1215_v9 }
  0x2e   : > { %1063 = vmatpush3.bf16.msra.mxu1 %v1062_v58  ;;  %1081 = vmatpush3.bf16.msra.mxu0 %v1050_v28 }
  0x2f   : > { %1064 = vmatprep.subr.bf16.mxu1 %v1149_v3  ;;  %1082 = vmatprep.subr.bf16.mxu0 %v1149_v3 }
  0x30   : > { %1007 = vmatprep.mubr.msk.f32.mxu1 %vm1150_vm1, %v1151_v7  ;;  %1046 = vmatprep.mubr.msk.f32.mxu0 %vm1150_vm1, %v1151_v7 }
  0x32   : > { %1066 = vmatpush3.bf16.msra.mxu1 %v1065_v59  ;;  %1084 = vmatpush3.bf16.msra.mxu0 %v1053_v34 }
  0x33   : > { %1005 = vmatprep.subr.mxu1 %v1151_v7  ;;  %1044 = vmatprep.subr.mxu0 %v1151_v7 }
  0x36   : > { %1006 = vmatpush3.msra.mxu1 %v456_v43  ;;  %1045 = vmatpush3.msra.mxu0 %v359_v38 }
  0x37   : > { %1008 = vmatmul.mubr.f32.vlgmr.msra.gmra.mrb[0].mxu1 %v1222_v12  ;;  %1047 = vmatmul.mubr.f32.vlgmr.msra.gmra.mrb[0].mxu0 %v1215_v9 }
  0x89   : > { %v340_v60 = vpop.permute.xlu0 %339 }
 0x10a   : > { %v600_v61 = vpop.f32.mrb[0].mxu1  ;;  %v840_v62 = vpop.f32.mrb[0].mxu0 }
 0x10b   : > { %v1085_v63 = vadd.f32 %v600_v61, %v340_v60  ;;  %v1009_v1 = vpop.f32.mrb[1].mxu1  ;;  %v1048_v2 = vpop.f32.mrb[1].mxu0 }
 0x10d   : > { %v1086_v3 = vadd.f32 %v1085_v63, %v840_v62 }
 0x10f   : > { %844 = vst [vmem:[%s211_s5] sm:$0xff] %v1086_v3 }
 0x110 PF: > { %s15_s19 = sadd.s32 1, %s1147_s19   ;;  %s1293_s17 = smov %s1143_s18 }
 0x111   : > { %p12_p5 = scmp.ge.s32.totalorder %s15_s19, 4   ;;  %s1294_s18 = smov %s1296_s3 }
 0x113   :  { %14 = sbr.rel (!%p12_p5) target bundleno = 2 (0x2), region = 70 }

</bundles_post_ra>
